<compile_context>
chip_gen: v5e
topology: v5e:2x2
jax: 0.10.0
libtpu: 0.0.40
codegen_flags: <defaults>
</compile_context>

<pallas_src>
import jax
import jax.numpy as jnp
from jax.experimental import pallas as pl
from jax.experimental.pallas import tpu as pltpu


# ----------------------------------------------------------------------------
# Fused kernel: mean_nodes + edge MLP + node MLP
# ----------------------------------------------------------------------------
def jet_fused_kernel(feat_ref, hid_ref,
                     # edge MLP params (W0 split into src / dst row blocks)
                     w0es_ref, w0ed_ref, b0e_ref, w1e_ref, b1e_ref, w2e_ref, b2e_ref,
                     # node MLP params (W0 split into feat / hid / mean row blocks)
                     w0nf_ref, w0nh_ref, w0nm_ref, b0n_ref, w1n_ref, b1n_ref, w2n_ref, b2n_ref,
                     node_out_ref, edge_out_ref):
    f32 = jnp.float32
    feat = feat_ref[...]                     # [N, F_feat]
    hid = hid_ref[...]                       # [N, F_hid]
    n = hid.shape[0]

    # ---- dgl.mean_nodes / broadcast_nodes (single graph): mean over node rows.
    mean_hid = jnp.mean(hid, axis=0, keepdims=True)                       # [1, F_hid]

    # ---- node classifier: build_layers = Linear, Linear, ReLU, Linear.
    # concat([feat, hid, mean_bcast]) @ W0 == feat@W0f + hid@W0h + mean@W0m
    # (the mean term is a [1, f0] row broadcast over all node rows -> free on VPU).
    h0n = (jnp.dot(feat, w0nf_ref[...], preferred_element_type=f32)
           + jnp.dot(hid, w0nh_ref[...], preferred_element_type=f32)
           + jnp.dot(mean_hid, w0nm_ref[...], preferred_element_type=f32)
           + b0n_ref[...])                                                # [N, f0n]
    h1n = jnp.maximum(
        jnp.dot(h0n, w1n_ref[...], preferred_element_type=f32) + b1n_ref[...], 0.0)
    node_out_ref[...] = (
        jnp.dot(h1n, w2n_ref[...], preferred_element_type=f32) + b2n_ref[...]
    ).astype(node_out_ref.dtype)                                          # [N, C]

    # ---- edge classifier over the all-pairs edge set (edge e = src*N + dst).
    # cat([h_src, h_dst]) @ W0e == h_src@W0e[:F_hid] + h_dst@W0e[F_hid:]
    a = jnp.dot(hid, w0es_ref[...], preferred_element_type=f32) + b0e_ref[...]  # src part, [N, f0e]
    b = jnp.dot(hid, w0ed_ref[...], preferred_element_type=f32)                 # dst part, [N, f0e]
    f0e = a.shape[1]
    # h0e[i*N + j] = a[i] + b[j], built only with static slices, sublane
    # broadcasts and sublane concatenation (safe Mosaic lowering, no reshapes).
    a_rep = jnp.concatenate(
        [jnp.broadcast_to(a[i:i + 1, :], (n, f0e)) for i in range(n)], axis=0)   # [E, f0e]
    b_rep = jnp.concatenate([b] * n, axis=0)                                     # [E, f0e]
    h0e = a_rep + b_rep
    h1e = jnp.maximum(
        jnp.dot(h0e, w1e_ref[...], preferred_element_type=f32) + b1e_ref[...], 0.0)
    edge_out_ref[...] = (
        jnp.dot(h1e, w2e_ref[...], preferred_element_type=f32) + b2e_ref[...]
    ).astype(edge_out_ref.dtype)                                          # [E, 1]


# ----------------------------------------------------------------------------
# Wrapper
# ----------------------------------------------------------------------------
@jax.jit
def jet_classifier_forward(node_features, node_hidden, edge_params, node_params):
    n, f_feat = node_features.shape
    f_hid = node_hidden.shape[1]
    e = n * n

    w0e, b0e, w1e, b1e, w2e, b2e = edge_params
    w0n, b0n, w1n, b1n, w2n, b2n = node_params
    n_classes = w2n.shape[1]

    # Split first-layer weights into row blocks (zero-cost slices of params);
    # the kernel sums partial dots instead of concatenating activations.
    w0e_src, w0e_dst = w0e[:f_hid], w0e[f_hid:]
    w0n_feat = w0n[:f_feat]
    w0n_hid = w0n[f_feat:f_feat + f_hid]
    w0n_mean = w0n[f_feat + f_hid:]

    args = (node_features, node_hidden,
            w0e_src, w0e_dst, b0e, w1e, b1e, w2e, b2e,
            w0n_feat, w0n_hid, w0n_mean, b0n, w1n, b1n, w2n, b2n)

    in_specs = [pl.BlockSpec(memory_space=pltpu.MemorySpace.VMEM) for _ in args]
    out_specs = (pl.BlockSpec(memory_space=pltpu.MemorySpace.VMEM),
                 pl.BlockSpec(memory_space=pltpu.MemorySpace.VMEM))

    node_pred, edge_score = pl.pallas_call(
        jet_fused_kernel,
        out_shape=(jax.ShapeDtypeStruct((n, n_classes), jnp.float32),
                   jax.ShapeDtypeStruct((e, 1), jnp.float32)),
        in_specs=in_specs,
        out_specs=out_specs,
        compiler_params=pltpu.CompilerParams(
            vmem_limit_bytes=32 * 1024 * 1024),  # <= physical VMEM on v5e/v6e/v7x
    )(*args)
    return node_pred, edge_score


# ----------------------------------------------------------------------------
# Parameter construction (deterministic, mirrors build_layers shapes: [in, out])
# ----------------------------------------------------------------------------
def make_mlp_params(key, inputsize, outputsize, features):
    # build_layers with len(features)==2 -> Linear, Linear, ReLU, Linear
    assert len(features) == 2
    dims = [inputsize, features[0], features[1], outputsize]
    params = []
    for li in range(3):
        key, kw = jax.random.split(key)
        fan_in, fan_out = dims[li], dims[li + 1]
        w = (jax.random.normal(kw, (fan_in, fan_out), jnp.float32)
             / jnp.sqrt(jnp.float32(fan_in)))
        b = jnp.zeros((1, fan_out), jnp.float32)
        params.extend([w, b])
    return tuple(params)


def mlp_reference(x, params):
    w0, b0, w1, b1, w2, b2 = params
    h0 = x @ w0 + b0                       # no activation after first Linear
    h1 = jnp.maximum(h0 @ w1 + b1, 0.0)    # ReLU only after the second Linear
    return h1 @ w2 + b2


# ----------------------------------------------------------------------------
if __name__ == "__main__":
    config = {
        "n classes": 4,
        "node feature size": 16,
        "hidden rep size": 8,
    }
    F_FEAT = config["node feature size"]
    F_HID = config["hidden rep size"]
    config["edge_inputsize"] = 2 * F_HID                   # src ++ dst hidden rep
    config["node_inputsize"] = F_FEAT + 2 * F_HID          # feat ++ hidden ++ mean
    config["edge classifer layers"] = [16, 16]
    config["node classifer layers"] = [32, 32]

    N_NODES = 8
    # fully-connected directed edge list (all ordered pairs incl. self-loops)
    ii, jj = jnp.meshgrid(jnp.arange(N_NODES), jnp.arange(N_NODES), indexing="ij")
    src = ii.reshape(-1).astype(jnp.int32)                 # [64]  (edge e = i*N + j)
    dst = jj.reshape(-1).astype(jnp.int32)                 # [64]

    key = jax.random.PRNGKey(0)
    k_feat, k_hid, k_edge, k_node = jax.random.split(key, 4)

    node_features = jax.random.normal(k_feat, (N_NODES, F_FEAT), jnp.float32)
    node_hidden = jax.random.normal(k_hid, (N_NODES, F_HID), jnp.float32)

    edge_params = make_mlp_params(
        k_edge, config["edge_inputsize"], 1, config["edge classifer layers"])
    node_params = make_mlp_params(
        k_node, config["node_inputsize"], config["n classes"],
        config["node classifer layers"])

    node_pred, edge_score = jet_classifier_forward(
        node_features, node_hidden, edge_params, node_params)
    jax.block_until_ready((node_pred, edge_score))

    assert node_pred.shape == (N_NODES, config["n classes"])
    assert edge_score.shape == (N_NODES * N_NODES, 1)

    # Pure-JAX reference (same math, un-fused / un-split weights).
    mean_rep = jnp.mean(node_hidden, axis=0, keepdims=True)
    node_data = jnp.concatenate(
        [node_features, node_hidden,
         jnp.broadcast_to(mean_rep, (N_NODES, F_HID))], axis=1)
    node_ref = mlp_reference(node_data, node_params)
    edge_in = jnp.concatenate(
        [jnp.take(node_hidden, src, axis=0),
         jnp.take(node_hidden, dst, axis=0)], axis=1)
    edge_ref = mlp_reference(edge_in, edge_params)

    # Loose tolerance: default TPU matmul precision may use bf16 passes.
    assert bool(jnp.all(jnp.isfinite(node_pred))) and bool(jnp.all(jnp.isfinite(edge_score)))
    assert jnp.allclose(node_pred, node_ref, rtol=5e-2, atol=5e-2)
    assert jnp.allclose(edge_score, edge_ref, rtol=5e-2, atol=5e-2)

    print("KERNEL_OK")
</pallas_src>

<mosaic_0001>
module attributes {stable_mosaic.version = 11 : i64} {
  func.func @jet_fused_kernel(%arg0: memref<8x16xf32, #tpu.memory_space<vmem>>, %arg1: memref<8x8xf32, #tpu.memory_space<vmem>>, %arg2: memref<8x16xf32, #tpu.memory_space<vmem>>, %arg3: memref<8x16xf32, #tpu.memory_space<vmem>>, %arg4: memref<1x16xf32, #tpu.memory_space<vmem>>, %arg5: memref<16x16xf32, #tpu.memory_space<vmem>>, %arg6: memref<1x16xf32, #tpu.memory_space<vmem>>, %arg7: memref<16x1xf32, #tpu.memory_space<vmem>>, %arg8: memref<1x1xf32, #tpu.memory_space<vmem>>, %arg9: memref<16x32xf32, #tpu.memory_space<vmem>>, %arg10: memref<8x32xf32, #tpu.memory_space<vmem>>, %arg11: memref<8x32xf32, #tpu.memory_space<vmem>>, %arg12: memref<1x32xf32, #tpu.memory_space<vmem>>, %arg13: memref<32x32xf32, #tpu.memory_space<vmem>>, %arg14: memref<1x32xf32, #tpu.memory_space<vmem>>, %arg15: memref<32x4xf32, #tpu.memory_space<vmem>>, %arg16: memref<1x4xf32, #tpu.memory_space<vmem>>, %arg17: memref<8x4xf32, #tpu.memory_space<vmem>>, %arg18: memref<64x1xf32, #tpu.memory_space<vmem>>) attributes {dimension_semantics = [], scalar_prefetch = 0 : i64, scratch_operands = 0 : i64, tpu.core_type = #tpu.core_type<tc>} {
    %c0 = arith.constant 0 : index
    %c0_0 = arith.constant 0 : index
    %0 = vector.load %arg0[%c0, %c0_0] : memref<8x16xf32, #tpu.memory_space<vmem>>, vector<8x16xf32>
    %c0_1 = arith.constant 0 : index
    %c0_2 = arith.constant 0 : index
    %1 = vector.load %arg1[%c0_1, %c0_2] : memref<8x8xf32, #tpu.memory_space<vmem>>, vector<8x8xf32>
    %cst = arith.constant dense<0.000000e+00> : vector<8xf32>
    %2 = vector.multi_reduction <add>, %1, %cst [0] : vector<8x8xf32> to vector<8xf32>
    %3 = vector.shape_cast %2 : vector<8xf32> to vector<1x8xf32>
    %cst_3 = arith.constant 8.000000e+00 : f32
    %4 = vector.broadcast %cst_3 : f32 to vector<1x8xf32>
    %5 = arith.divf %3, %4 : vector<1x8xf32>
    %c0_4 = arith.constant 0 : index
    %c0_5 = arith.constant 0 : index
    %6 = vector.load %arg9[%c0_4, %c0_5] : memref<16x32xf32, #tpu.memory_space<vmem>>, vector<16x32xf32>
    %cst_6 = arith.constant dense<0.000000e+00> : vector<8x32xf32>
    %7 = tpu.matmul %0, %6, %cst_6 {dimension_numbers = #tpu.dot_dimension_numbers<[1], [0], [0], [1], [0, 0, 1, 1], [], []>} : vector<8x16xf32>, vector<16x32xf32>, vector<8x32xf32> -> vector<8x32xf32>
    %c0_7 = arith.constant 0 : index
    %c0_8 = arith.constant 0 : index
    %8 = vector.load %arg10[%c0_7, %c0_8] : memref<8x32xf32, #tpu.memory_space<vmem>>, vector<8x32xf32>
    %cst_9 = arith.constant dense<0.000000e+00> : vector<8x32xf32>
    %9 = tpu.matmul %1, %8, %cst_9 {dimension_numbers = #tpu.dot_dimension_numbers<[1], [0], [0], [1], [0, 0, 1, 1], [], []>} : vector<8x8xf32>, vector<8x32xf32>, vector<8x32xf32> -> vector<8x32xf32>
    %10 = arith.addf %7, %9 : vector<8x32xf32>
    %c0_10 = arith.constant 0 : index
    %c0_11 = arith.constant 0 : index
    %11 = vector.load %arg11[%c0_10, %c0_11] : memref<8x32xf32, #tpu.memory_space<vmem>>, vector<8x32xf32>
    %cst_12 = arith.constant dense<0.000000e+00> : vector<1x32xf32>
    %12 = tpu.matmul %5, %11, %cst_12 {dimension_numbers = #tpu.dot_dimension_numbers<[1], [0], [0], [1], [0, 0, 1, 1], [], []>} : vector<1x8xf32>, vector<8x32xf32>, vector<1x32xf32> -> vector<1x32xf32>
    %13 = vector.broadcast %12 : vector<1x32xf32> to vector<8x32xf32>
    %14 = arith.addf %10, %13 : vector<8x32xf32>
    %c0_13 = arith.constant 0 : index
    %c0_14 = arith.constant 0 : index
    %15 = vector.load %arg12[%c0_13, %c0_14] : memref<1x32xf32, #tpu.memory_space<vmem>>, vector<1x32xf32>
    %16 = vector.broadcast %15 : vector<1x32xf32> to vector<8x32xf32>
    %17 = arith.addf %14, %16 : vector<8x32xf32>
    %c0_15 = arith.constant 0 : index
    %c0_16 = arith.constant 0 : index
    %18 = vector.load %arg13[%c0_15, %c0_16] : memref<32x32xf32, #tpu.memory_space<vmem>>, vector<32x32xf32>
    %cst_17 = arith.constant dense<0.000000e+00> : vector<8x32xf32>
    %19 = tpu.matmul %17, %18, %cst_17 {dimension_numbers = #tpu.dot_dimension_numbers<[1], [0], [0], [1], [0, 0, 1, 1], [], []>} : vector<8x32xf32>, vector<32x32xf32>, vector<8x32xf32> -> vector<8x32xf32>
    %c0_18 = arith.constant 0 : index
    %c0_19 = arith.constant 0 : index
    %20 = vector.load %arg14[%c0_18, %c0_19] : memref<1x32xf32, #tpu.memory_space<vmem>>, vector<1x32xf32>
    %21 = vector.broadcast %20 : vector<1x32xf32> to vector<8x32xf32>
    %22 = arith.addf %19, %21 : vector<8x32xf32>
    %cst_20 = arith.constant 0.000000e+00 : f32
    %23 = vector.broadcast %cst_20 : f32 to vector<8x32xf32>
    %24 = arith.maximumf %22, %23 : vector<8x32xf32>
    %c0_21 = arith.constant 0 : index
    %c0_22 = arith.constant 0 : index
    %25 = vector.load %arg15[%c0_21, %c0_22] : memref<32x4xf32, #tpu.memory_space<vmem>>, vector<32x4xf32>
    %cst_23 = arith.constant dense<0.000000e+00> : vector<8x4xf32>
    %26 = tpu.matmul %24, %25, %cst_23 {dimension_numbers = #tpu.dot_dimension_numbers<[1], [0], [0], [1], [0, 0, 1, 1], [], []>} : vector<8x32xf32>, vector<32x4xf32>, vector<8x4xf32> -> vector<8x4xf32>
    %c0_24 = arith.constant 0 : index
    %c0_25 = arith.constant 0 : index
    %27 = vector.load %arg16[%c0_24, %c0_25] : memref<1x4xf32, #tpu.memory_space<vmem>>, vector<1x4xf32>
    %28 = vector.broadcast %27 : vector<1x4xf32> to vector<8x4xf32>
    %29 = arith.addf %26, %28 : vector<8x4xf32>
    %c0_26 = arith.constant 0 : index
    %c0_27 = arith.constant 0 : index
    %30 = vector.load %arg17[%c0_26, %c0_27] : memref<8x4xf32, #tpu.memory_space<vmem>>, vector<8x4xf32>
    tpu.vector_store %arg17[%c0_26, %c0_27], %29 {strides = array<i32>} : memref<8x4xf32, #tpu.memory_space<vmem>>, vector<8x4xf32>,
    %c0_28 = arith.constant 0 : index
    %c0_29 = arith.constant 0 : index
    %31 = vector.load %arg2[%c0_28, %c0_29] : memref<8x16xf32, #tpu.memory_space<vmem>>, vector<8x16xf32>
    %cst_30 = arith.constant dense<0.000000e+00> : vector<8x16xf32>
    %32 = tpu.matmul %1, %31, %cst_30 {dimension_numbers = #tpu.dot_dimension_numbers<[1], [0], [0], [1], [0, 0, 1, 1], [], []>} : vector<8x8xf32>, vector<8x16xf32>, vector<8x16xf32> -> vector<8x16xf32>
    %c0_31 = arith.constant 0 : index
    %c0_32 = arith.constant 0 : index
    %33 = vector.load %arg4[%c0_31, %c0_32] : memref<1x16xf32, #tpu.memory_space<vmem>>, vector<1x16xf32>
    %34 = vector.broadcast %33 : vector<1x16xf32> to vector<8x16xf32>
    %35 = arith.addf %32, %34 : vector<8x16xf32>
    %c0_33 = arith.constant 0 : index
    %c0_34 = arith.constant 0 : index
    %36 = vector.load %arg3[%c0_33, %c0_34] : memref<8x16xf32, #tpu.memory_space<vmem>>, vector<8x16xf32>
    %cst_35 = arith.constant dense<0.000000e+00> : vector<8x16xf32>
    %37 = tpu.matmul %1, %36, %cst_35 {dimension_numbers = #tpu.dot_dimension_numbers<[1], [0], [0], [1], [0, 0, 1, 1], [], []>} : vector<8x8xf32>, vector<8x16xf32>, vector<8x16xf32> -> vector<8x16xf32>
    %38 = vector.extract_strided_slice %35 {offsets = [0, 0], sizes = [1, 16], strides = [1, 1]} : vector<8x16xf32> to vector<1x16xf32>
    %39 = vector.shape_cast %38 : vector<1x16xf32> to vector<1x16xf32>
    %40 = vector.broadcast %39 : vector<1x16xf32> to vector<8x16xf32>
    %41 = vector.extract_strided_slice %35 {offsets = [1, 0], sizes = [1, 16], strides = [1, 1]} : vector<8x16xf32> to vector<1x16xf32>
    %42 = vector.shape_cast %41 : vector<1x16xf32> to vector<1x16xf32>
    %43 = vector.broadcast %42 : vector<1x16xf32> to vector<8x16xf32>
    %44 = vector.extract_strided_slice %35 {offsets = [2, 0], sizes = [1, 16], strides = [1, 1]} : vector<8x16xf32> to vector<1x16xf32>
    %45 = vector.shape_cast %44 : vector<1x16xf32> to vector<1x16xf32>
    %46 = vector.broadcast %45 : vector<1x16xf32> to vector<8x16xf32>
    %47 = vector.extract_strided_slice %35 {offsets = [3, 0], sizes = [1, 16], strides = [1, 1]} : vector<8x16xf32> to vector<1x16xf32>
    %48 = vector.shape_cast %47 : vector<1x16xf32> to vector<1x16xf32>
    %49 = vector.broadcast %48 : vector<1x16xf32> to vector<8x16xf32>
    %50 = vector.extract_strided_slice %35 {offsets = [4, 0], sizes = [1, 16], strides = [1, 1]} : vector<8x16xf32> to vector<1x16xf32>
    %51 = vector.shape_cast %50 : vector<1x16xf32> to vector<1x16xf32>
    %52 = vector.broadcast %51 : vector<1x16xf32> to vector<8x16xf32>
    %53 = vector.extract_strided_slice %35 {offsets = [5, 0], sizes = [1, 16], strides = [1, 1]} : vector<8x16xf32> to vector<1x16xf32>
    %54 = vector.shape_cast %53 : vector<1x16xf32> to vector<1x16xf32>
    %55 = vector.broadcast %54 : vector<1x16xf32> to vector<8x16xf32>
    %56 = vector.extract_strided_slice %35 {offsets = [6, 0], sizes = [1, 16], strides = [1, 1]} : vector<8x16xf32> to vector<1x16xf32>
    %57 = vector.shape_cast %56 : vector<1x16xf32> to vector<1x16xf32>
    %58 = vector.broadcast %57 : vector<1x16xf32> to vector<8x16xf32>
    %59 = vector.extract_strided_slice %35 {offsets = [7, 0], sizes = [1, 16], strides = [1, 1]} : vector<8x16xf32> to vector<1x16xf32>
    %60 = vector.shape_cast %59 : vector<1x16xf32> to vector<1x16xf32>
    %61 = vector.broadcast %60 : vector<1x16xf32> to vector<8x16xf32>
    %62 = tpu.concatenate %40, %43, %46, %49, %52, %55, %58, %61 in 0 : vector<8x16xf32>, vector<8x16xf32>, vector<8x16xf32>, vector<8x16xf32>, vector<8x16xf32>, vector<8x16xf32>, vector<8x16xf32>, vector<8x16xf32> -> vector<64x16xf32>
    %63 = tpu.concatenate %37, %37, %37, %37, %37, %37, %37, %37 in 0 : vector<8x16xf32>, vector<8x16xf32>, vector<8x16xf32>, vector<8x16xf32>, vector<8x16xf32>, vector<8x16xf32>, vector<8x16xf32>, vector<8x16xf32> -> vector<64x16xf32>
    %64 = arith.addf %62, %63 : vector<64x16xf32>
    %c0_36 = arith.constant 0 : index
    %c0_37 = arith.constant 0 : index
    %65 = vector.load %arg5[%c0_36, %c0_37] : memref<16x16xf32, #tpu.memory_space<vmem>>, vector<16x16xf32>
    %cst_38 = arith.constant dense<0.000000e+00> : vector<64x16xf32>
    %66 = tpu.matmul %64, %65, %cst_38 {dimension_numbers = #tpu.dot_dimension_numbers<[1], [0], [0], [1], [0, 0, 1, 1], [], []>} : vector<64x16xf32>, vector<16x16xf32>, vector<64x16xf32> -> vector<64x16xf32>
    %c0_39 = arith.constant 0 : index
    %c0_40 = arith.constant 0 : index
    %67 = vector.load %arg6[%c0_39, %c0_40] : memref<1x16xf32, #tpu.memory_space<vmem>>, vector<1x16xf32>
    %68 = vector.broadcast %67 : vector<1x16xf32> to vector<64x16xf32>
    %69 = arith.addf %66, %68 : vector<64x16xf32>
    %cst_41 = arith.constant 0.000000e+00 : f32
    %70 = vector.broadcast %cst_41 : f32 to vector<64x16xf32>
    %71 = arith.maximumf %69, %70 : vector<64x16xf32>
    %c0_42 = arith.constant 0 : index
    %c0_43 = arith.constant 0 : index
    %72 = vector.load %arg7[%c0_42, %c0_43] : memref<16x1xf32, #tpu.memory_space<vmem>>, vector<16x1xf32>
    %cst_44 = arith.constant dense<0.000000e+00> : vector<64x1xf32>
    %73 = tpu.matmul %71, %72, %cst_44 {dimension_numbers = #tpu.dot_dimension_numbers<[1], [0], [0], [1], [0, 0, 1, 1], [], []>} : vector<64x16xf32>, vector<16x1xf32>, vector<64x1xf32> -> vector<64x1xf32>
    %c0_45 = arith.constant 0 : index
    %c0_46 = arith.constant 0 : index
    %74 = vector.load %arg8[%c0_45, %c0_46] : memref<1x1xf32, #tpu.memory_space<vmem>>, vector<1x1xf32>
    %75 = vector.broadcast %74 : vector<1x1xf32> to vector<64x1xf32>
    %76 = arith.addf %73, %75 : vector<64x1xf32>
    %c0_47 = arith.constant 0 : index
    %c0_48 = arith.constant 0 : index
    %77 = vector.load %arg18[%c0_47, %c0_48] : memref<64x1xf32, #tpu.memory_space<vmem>>, vector<64x1xf32>
    tpu.vector_store %arg18[%c0_47, %c0_48], %76 {strides = array<i32>} : memref<64x1xf32, #tpu.memory_space<vmem>>, vector<64x1xf32>,
    return
  }
}

</mosaic_0001>

<bundles_post_ra>
// kernel: jet_classifier_forward.1
= control target key start
LH: loop header
LB: loop body
LE: loop exit
PB: predicated region body
PF: predicated region fallthrough
CT: control target
= control target key end

     0   :  { %vm62_vm0 = vcmask 64512   ;;  %v490_v2 = vmov 8.0   ;;  %vm104_vm1 = vcmask 130048   ;;  %vm167_vm3 = vcmask 261120   ;;  %s723_s11 = inlined_call_operand.vmem [shape: f32[8,32], index: 11, kind: input, shape index: {}]   ;;  %s724_s1 = inlined_call_operand.vmem [shape: f32[8,8], index: 1, kind: input, shape index: {}]   ;;  %s725_s2 = inlined_call_operand.vmem [shape: f32[8,16], index: 2, kind: input, shape index: {}]   ;;  %s726_s9 = inlined_call_operand.vmem [shape: f32[16,32], index: 9, kind: input, shape index: {}]   ;;  %s727_s10 = inlined_call_operand.vmem [shape: f32[8,32], index: 10, kind: input, shape index: {}]   ;;  %s728_s0 = inlined_call_operand.vmem [shape: f32[8,16], index: 0, kind: input, shape index: {}]   ;;  %s729_s3 = inlined_call_operand.vmem [shape: f32[8,16], index: 3, kind: input, shape index: {}]   ;;  %s730_s12 = inlined_call_operand.vmem [shape: f32[1,32], index: 12, kind: input, shape index: {}]   ;;  %s731_s4 = inlined_call_operand.vmem [shape: f32[1,16], index: 4, kind: input, shape index: {}]   ;;  %s732_s14 = inlined_call_operand.vmem [shape: f32[1,32], index: 14, kind: input, shape index: {}]   ;;  %s733_s13 = inlined_call_operand.vmem [shape: f32[32,32], index: 13, kind: input, shape index: {}]   ;;  %s734_s5 = inlined_call_operand.vmem [shape: f32[16,16], index: 5, kind: input, shape index: {}]   ;;  %s735_s6 = inlined_call_operand.vmem [shape: f32[1,16], index: 6, kind: input, shape index: {}]   ;;  %s736_s15 = inlined_call_operand.vmem [shape: f32[32,4], index: 15, kind: input, shape index: {}]   ;;  %s737_s16 = inlined_call_operand.vmem [shape: f32[1,4], index: 16, kind: input, shape index: {}]   ;;  %s738_s7 = inlined_call_operand.vmem [shape: f32[16,1], index: 7, kind: input, shape index: {}]   ;;  %s739_s8 = inlined_call_operand.<no memory space> [shape: f32[1,1], index: 8, kind: input, shape index: {}]   ;;  %s740_s17 = inlined_call_operand.vmem [shape: f32[8,4], index: 17, kind: output, shape index: {0}]   ;;  %s741_s18 = inlined_call_operand.vmem [shape: f32[64,1], index: 18, kind: output, shape index: {1}]  }
   0x1   :  { %742 = sst [smem:[#allocation3_spill]] %s723_s11  ;;  %488 = vrcp.f32 %v490_v2  ;;  %v79_v5 = vld [vmem:[%s726_s9 + $0x8] sm:$0xff]  ;;  %v80_v6 = vld [vmem:[%s727_s10] sm:$0xff]  ;;  %v162_v23 = vld [vmem:[%s733_s13 + $0x18] sm:$0xff]  ;;  %vm223_vm4 = vcmask 31744   ;;  %vm437_vm5 = vcmask 7168  }
   0x2   :  { %743 = sst [smem:[#allocation4_spill]] %s724_s1  ;;  %v78_v7 = vld [vmem:[%s726_s9] sm:$0xff]  ;;  %122 = vmatpush.msra.mxu1 %v79_v5  ;;  %99 = vmatpush.msra.mxu0 %v80_v6  ;;  %v161_v24 = vld [vmem:[%s733_s13 + $0x10] sm:$0xff]  ;;  %v160_v25 = vld [vmem:[%s733_s13 + $0x8] sm:$0xff] }
   0x3   :  { %744 = sst [smem:[#allocation5_spill]] %s725_s2  ;;  %v60_v9 = vld [vmem:[%s728_s0] sm:$0xff]  ;;  %v288_v27 = vld [vmem:[%s734_s5 + $0x8] sm:$0xff]  ;;  %v195_v45 = vld [vmem:[%s736_s15 + $0x18] sm:$0xff] }
   0x4   :  { %s745_s29 = sld [smem:[#allocation3_spill]]  ;;  %v250_v10 = vld [vmem:[%s729_s3] sm:$0xff]  ;;  %123 = vmatpush.msra.mxu1 %v78_v7  ;;  %215 = vmatpush.msrb.mxu0 %v195_v45  ;;  %v194_v58 = vld [vmem:[%s736_s15 + $0x10] sm:$0xff]  ;;  %v193_v59 = vld [vmem:[%s736_s15 + $0x8] sm:$0xff] }
   0x5   :  { %s746_s19 = sld [smem:[#allocation4_spill]]  ;;  %266 = vmatpush.msra.mxu3 %v250_v10  ;;  %455 = vmatmul.msk.f32.vlgmr.msra.gmra.mxu1 %vm104_vm1, %v60_v9  ;;  %v159_v26 = vld [vmem:[%s733_s13] sm:$0xff]  ;;  %v367_v61 = vld [vmem:[%s738_s7 + $0x8] sm:$0xff] }
   0x6   :  { %s747_s21 = sld [smem:[#allocation5_spill]]  ;;  %183 = vmatpush.msrb.mxu1 %v162_v23  ;;  %v287_v28 = vld [vmem:[%s734_s5] sm:$0xff]  ;;  %216 = vmatpush.msrb.mxu0 %v194_v58 }
   0x7   :  { %v489_v12 = vpop.eup %488  ;;  %477 = vmatpush.msrb.mxu3 %v288_v27  ;;  %v482_v34 = vld [vmem:[%s730_s12] ss:$0 sm:$0xff] }
   0x8   :  { %v71_v14 = vmul.f32 8.0, %v489_v12  ;;  %vm75_vm2 = vweird.f32 %v489_v12  ;;  %184 = vmatpush.msrb.mxu1 %v161_v24  ;;  %v483_v37 = vld [vmem:[%s731_s4] ss:$0 sm:$0xff]  ;;  %217 = vmatpush.msrb.mxu0 %v193_v59 }
   0x9   :  { %478 = vmatpush.msrb.mxu3 %v287_v28  ;;  %v192_v60 = vld [vmem:[%s736_s15] sm:$0xff] }
   0xa   :  { %v128_v0 = vld [vmem:[%s745_s29] sm:$0xff]  ;;  %v72_v16 = vsub.f32 1.0, %v71_v14  ;;  %185 = vmatpush.msrb.mxu1 %v160_v25  ;;  %218 = vmatpush.msrb.mxu0 %v192_v60 }
   0xb   :  { %v61_v1 = vld [vmem:[%s746_s19] sm:$0xff]  ;;  %147 = vmatpush.msra.mxu2 %v128_v0 }
   0xc   :  { %v225_v3 = vld [vmem:[%s747_s21] sm:$0xff]  ;;  %v63_v4 = vsel %vm62_vm0, %v61_v1, 0.0  ;;  %454 = vmatmul.msk.f32.vlgmr.msra.gmra.mxu0 %vm62_vm0, %v61_v1  ;;  %460 = vmatmul.msk.f32.vlgmr.msra.gmra.mxu3 %vm62_vm0, %v61_v1  ;;  %v73_v18 = vmul.f32 %v489_v12, %v72_v16 }
   0xd   :  { %v64_v8 = vrot.slane %v63_v4, 4  ;;  %245 = vmatpush.msrb.mxu2 %v225_v3  ;;  %186 = vmatpush.msrb.mxu1 %v159_v26  ;;  %v366_v62 = vld [vmem:[%s738_s7] sm:$0xff] }
   0xe   :  { %v74_v20 = vadd.f32 %v489_v12, %v73_v18  ;;  %410 = vmatpush.msra.mxu0 %v367_v61  ;;  %v484_v63 = vld [vmem:[%s732_s14] ss:$0 sm:$0xff] }
   0xf   :  { %v65_v11 = vadd.f32 %v64_v8, %v63_v4  ;;  %331 = vmatpush.msra.mxu1 %v288_v27  ;;  %v485_v3 = vld [vmem:[%s735_s6] ss:$0 sm:$0xff] }
  0x10   :  { %v76_v21 = vsel %vm75_vm2, %v489_v12, %v74_v20  ;;  %411 = vmatpush.msra.mxu0 %v366_v62 }
  0x11   :  { %v66_v13 = vrot.slane %v65_v11, 2  ;;  %332 = vmatpush.msra.mxu1 %v287_v28  ;;  %v24_v28 = vstv %s739_s8 }
  0x12   :  { %25 = vst [vmem:[#allocation2] sm:$0x1] %v24_v28 }
  0x13   :  { %v67_v15 = vadd.f32 %v66_v13, %v65_v11 }
  0x15   :  { %v68_v17 = vrot.slane %v67_v15, 1 }
  0x17   :  { %v69_v19 = vadd.f32 %v68_v17, %v67_v15 }
  0x19   :  { %v77_v22 = vmul.f32 %v76_v21, %v69_v19 }
  0x1b   :  { %456 = vmatmul.msk.f32.vlgmr.msra.gmra.mxu2 %vm62_vm0, %v77_v22 }
  0x1c   :  { %479 = vmatpush.msra.mxu2 %v367_v61 }
  0x1e   :  { %480 = vmatpush.msra.mxu2 %v366_v62 }
  0x23   :  { %459 = vmatmul.msk.f32.vlgmr.msrb.gmra.mxu2 %vm62_vm0, %v61_v1 }
  0x82   :  { %v125_v30 = vpop.f32.mrf.mxu1 }
  0x89   :  { %v101_v29 = vpop.f32.mrf.mxu0 }
  0x8a   :  { %v126_v31 = vadd.f32 %v125_v30, %v101_v29  ;;  %v486_v29 = vld [vmem:[%s737_s16] ss:$0 sm:$0xff] }
  0x8f   :  { %v268_v40 = vpop.f32.mrf.mxu3 }
  0x9e   :  { %v149_v32 = vpop.f32.mrf.mxu2 }
  0x9f   :  { %v152_v33 = vperm.slane %v149_v32, 0  ;;  %v487_v32 = vld [vmem:[#allocation2] ss:$0 sm:$0xff] }
  0xa1   :  { %v153_v35 = vadd.f32 %v152_v33, %v126_v31 }
  0xa3   :  { %v158_v36 = vadd.f32 %v482_v34, %v153_v35 }
  0xa5   :  { %457 = vmatmul.msk.f32.vlgmr.msrb.gmra.mxu1 %vm167_vm3, %v158_v36 }
  0xa6   :  { %v247_v38 = vpop.f32.mrf.mxu2 }
  0xa7   :  { %v248_v39 = vadd.f32 %v483_v37, %v247_v38 }
  0xa9   :  { %v271_v41 = vperm.slane %v248_v39, 0  ;;  %v274_v42 = vperm.slane %v248_v39, 3  ;;  %v272_v46 = vperm.slane %v248_v39, 1  ;;  %v275_v47 = vperm.slane %v248_v39, 4 }
  0xaa   :  { %v273_v50 = vperm.slane %v248_v39, 2  ;;  %v276_v51 = vperm.slane %v248_v39, 5  ;;  %v277_v54 = vperm.slane %v248_v39, 6  ;;  %v278_v56 = vperm.slane %v248_v39, 7 }
  0xab   :  { %v279_v43 = vadd.f32 %v271_v41, %v268_v40  ;;  %v282_v44 = vadd.f32 %v274_v42, %v268_v40  ;;  %v280_v48 = vadd.f32 %v272_v46, %v268_v40  ;;  %v283_v49 = vadd.f32 %v275_v47, %v268_v40 }
  0xac   :  { %v281_v52 = vadd.f32 %v273_v50, %v268_v40  ;;  %v284_v53 = vadd.f32 %v276_v51, %v268_v40  ;;  %v285_v55 = vadd.f32 %v277_v54, %v268_v40  ;;  %v286_v57 = vadd.f32 %v278_v56, %v268_v40 }
  0xad   :  { %461 = vmatmul.msk.f32.vlgmr.msra.gmra.mxu1 %vm104_vm1, %v279_v43  ;;  %464 = vmatmul.msk.f32.vlgmr.msrb.gmra.mxu3 %vm104_vm1, %v282_v44 }
  0xb5   :  { %462 = vmatmul.msk.f32.gmra.mxu1 %vm104_vm1, %v280_v48  ;;  %465 = vmatmul.msk.f32.gmra.mxu3 %vm104_vm1, %v283_v49 }
  0xbd   :  { %463 = vmatmul.msk.f32.gmra.mxu1 %vm104_vm1, %v281_v52  ;;  %466 = vmatmul.msk.f32.gmra.mxu3 %vm104_vm1, %v284_v53 }
  0xc5   :  { %467 = vmatmul.msk.f32.gmra.mxu3 %vm104_vm1, %v285_v55 }
  0xcd   :  { %468 = vmatmul.msk.f32.gmra.mxu3 %vm104_vm1, %v286_v57 }
 0x122   :  { %v188_v0 = vpop.f32.mrf.mxu1 }
 0x123   :  { %v189_v1 = vadd.f32 %v484_v63, %v188_v0 }
 0x125   :  { %v191_v2 = vmax.f32 %v189_v1, 0.0 }
 0x127   :  { %458 = vmatmul.msk.f32.vlgmr.msrb.gmra.mxu0 %vm167_vm3, %v191_v2 }
 0x12a   :  { %v334_v4 = vpop.f32.mrf.mxu1 }
 0x12b   :  { %v335_v5 = vadd.f32 %v485_v3, %v334_v4 }
 0x12d   :  { %v358_v6 = vmax.f32 %v335_v5, 0.0 }
 0x12f   :  { %469 = vmatmul.msk.f32.vlgmr.msra.gmra.mxu0 %vm104_vm1, %v358_v6 }
 0x130   :  { %v343_v7 = vpop.f32.mrf.mxu3 }
 0x131   :  { %v344_v18 = vadd.f32 %v485_v3, %v343_v7 }
 0x132   :  { %v337_v8 = vpop.f32.mrf.mxu1 }
 0x133   :  { %v338_v9 = vadd.f32 %v485_v3, %v337_v8  ;;  %v361_v21 = vmax.f32 %v344_v18, 0.0 }
 0x135   :  { %v359_v10 = vmax.f32 %v338_v9, 0.0 }
 0x137   :  { %470 = vmatmul.msk.f32.gmra.mxu0 %vm104_vm1, %v359_v10 }
 0x138   :  { %v346_v11 = vpop.f32.mrf.mxu3 }
 0x139   :  { %v347_v12 = vadd.f32 %v485_v3, %v346_v11 }
 0x13a   :  { %v340_v13 = vpop.f32.mrf.mxu1 }
 0x13b   :  { %v362_v14 = vmax.f32 %v347_v12, 0.0  ;;  %v341_v15 = vadd.f32 %v485_v3, %v340_v13 }
 0x13d   :  { %v360_v16 = vmax.f32 %v341_v15, 0.0  ;;  %473 = vmatmul.msk.f32.vlgmr.msra.gmra.mxu2 %vm104_vm1, %v362_v14 }
 0x13f   :  { %471 = vmatmul.msk.f32.gmra.mxu0 %vm104_vm1, %v360_v16 }
 0x140   :  { %v349_v17 = vpop.f32.mrf.mxu3 }
 0x141   :  { %v350_v19 = vadd.f32 %v485_v3, %v349_v17 }
 0x143   :  { %v363_v20 = vmax.f32 %v350_v19, 0.0 }
 0x145   :  { %474 = vmatmul.msk.f32.gmra.mxu2 %vm104_vm1, %v363_v20 }
 0x147   :  { %472 = vmatmul.msk.f32.gmra.mxu0 %vm104_vm1, %v361_v21 }
 0x148   :  { %v352_v22 = vpop.f32.mrf.mxu3 }
 0x149   :  { %v353_v23 = vadd.f32 %v485_v3, %v352_v22 }
 0x14b   :  { %v364_v24 = vmax.f32 %v353_v23, 0.0 }
 0x14d   :  { %475 = vmatmul.msk.f32.gmra.mxu2 %vm104_vm1, %v364_v24 }
 0x150   :  { %v355_v25 = vpop.f32.mrf.mxu3 }
 0x151   :  { %v356_v26 = vadd.f32 %v485_v3, %v355_v25 }
 0x153   :  { %v365_v27 = vmax.f32 %v356_v26, 0.0 }
 0x155   :  { %476 = vmatmul.msk.f32.gmra.mxu2 %vm104_vm1, %v365_v27 }
 0x1a4   :  { %v220_v30 = vpop.f32.mrf.mxu0 }
 0x1a5   :  { %v221_v31 = vadd.f32 %v486_v29, %v220_v30 }
 0x1a7   :  { %224 = vst.msk [vmem:[%s740_s17] sm:$0xff] %vm223_vm4, %v221_v31 }
 0x1ac   :  { %v413_v33 = vpop.f32.mrf.mxu0 }
 0x1ad   :  { %v414_v34 = vadd.f32 %v487_v32, %v413_v33 }
 0x1af   :  { %438 = vst.msk [vmem:[%s741_s18] sm:$0xff] %vm437_vm5, %v414_v34 }
 0x1b4   :  { %v416_v35 = vpop.f32.mrf.mxu0 }
 0x1b5   :  { %v417_v36 = vadd.f32 %v487_v32, %v416_v35 }
 0x1b7   :  { %439 = vst.msk [vmem:[%s741_s18 + $0x8] sm:$0xff] %vm437_vm5, %v417_v36 }
 0x1bc   :  { %v419_v37 = vpop.f32.mrf.mxu0 }
 0x1bd   :  { %v420_v38 = vadd.f32 %v487_v32, %v419_v37 }
 0x1bf   :  { %440 = vst.msk [vmem:[%s741_s18 + $0x10] sm:$0xff] %vm437_vm5, %v420_v38 }
 0x1c0   :  { %v425_v39 = vpop.f32.mrf.mxu2 }
 0x1c1   :  { %v426_v40 = vadd.f32 %v487_v32, %v425_v39 }
 0x1c3   :  { %442 = vst.msk [vmem:[%s741_s18 + $0x20] sm:$0xff] %vm437_vm5, %v426_v40 }
 0x1c4   :  { %v422_v41 = vpop.f32.mrf.mxu0 }
 0x1c5   :  { %v423_v42 = vadd.f32 %v487_v32, %v422_v41 }
 0x1c7   :  { %441 = vst.msk [vmem:[%s741_s18 + $0x18] sm:$0xff] %vm437_vm5, %v423_v42 }
 0x1c8   :  { %v428_v43 = vpop.f32.mrf.mxu2 }
 0x1c9   :  { %v429_v44 = vadd.f32 %v487_v32, %v428_v43 }
 0x1cb   :  { %443 = vst.msk [vmem:[%s741_s18 + $0x28] sm:$0xff] %vm437_vm5, %v429_v44 }
 0x1d0   :  { %v431_v45 = vpop.f32.mrf.mxu2 }
 0x1d1   :  { %v432_v46 = vadd.f32 %v487_v32, %v431_v45 }
 0x1d3   :  { %444 = vst.msk [vmem:[%s741_s18 + $0x30] sm:$0xff] %vm437_vm5, %v432_v46 }
 0x1d8   :  { %v434_v47 = vpop.f32.mrf.mxu2 }
 0x1d9   :  { %v435_v48 = vadd.f32 %v487_v32, %v434_v47 }
 0x1db   :  { %445 = vst.msk [vmem:[%s741_s18 + $0x38] sm:$0xff] %vm437_vm5, %v435_v48 }

</bundles_post_ra>
